<compile_context>
chip_gen: v6e
topology: v6e:2x2x1
jax: 0.10.0
libtpu: 0.0.40
codegen_flags: <defaults>
</compile_context>

<pallas_src>
import functools
import math

import jax
import jax.numpy as jnp
from jax.experimental import pallas as pl
from jax.experimental.pallas import tpu as pltpu


# ----------------------------------------------------------------------------
# helpers for tile selection
# ----------------------------------------------------------------------------
def _group_tile(bl):
    """Smallest multiple of bl that is also a multiple of 128 (lane width)."""
    return bl * (128 // math.gcd(128, bl))


def _pick_lane_tile(lq, tile, cap=1024):
    """Largest multiple of `tile` that divides lq and is <= cap."""
    lt = tile
    while lt * 2 <= cap and lq % (lt * 2) == 0:
        lt *= 2
    return lt


# ----------------------------------------------------------------------------
# Kernel 1: lane-tiled pointwise (1x1) Conv1d  ==  W @ X + b
# ----------------------------------------------------------------------------
def _pointwise_kernel(x_ref, w_ref, b_ref, o_ref):
    o_ref[...] = (
        jnp.dot(w_ref[...].astype(jnp.bfloat16),
                x_ref[...].astype(jnp.bfloat16),
                preferred_element_type=jnp.float32)
        + b_ref[...]
    ).astype(o_ref.dtype)


@functools.partial(jax.jit, static_argnames=("lane_tile", "out_dtype"))
def pointwise_conv(x, w, b, *, lane_tile, out_dtype=jnp.float32):
    """x: (Cin, Lq), w: (Cout, Cin), b: (Cout,) -> (Cout, Lq)."""
    cin, lq = x.shape
    cout = w.shape[0]
    return pl.pallas_call(
        _pointwise_kernel,
        out_shape=jax.ShapeDtypeStruct((cout, lq), out_dtype),
        grid=(lq // lane_tile,),
        in_specs=[
            pl.BlockSpec((cin, lane_tile), lambda i: (0, i)),
            pl.BlockSpec((cout, cin), lambda i: (0, 0)),
            pl.BlockSpec((cout, 1), lambda i: (0, 0)),
        ],
        out_specs=pl.BlockSpec((cout, lane_tile), lambda i: (0, i)),
        compiler_params=pltpu.CompilerParams(dimension_semantics=("parallel",)),
    )(x, w, b.reshape(cout, 1))


# ----------------------------------------------------------------------------
# Kernel 2: LIDTCN dual-dilated residual block (composed weights, L-tiled)
#   y = x + ReLU( sum_taps  (wf_half @ W_tap) @ shift(x*valid, off_tap)  + b )
# ----------------------------------------------------------------------------
def _tcn_kernel(xpad_ref, xres_ref, w_ref, b_ref, o_ref, *, lane_tile, halo, offs):
    base = pl.program_id(0) * lane_tile
    cout = o_ref.shape[0]
    acc = jnp.zeros((cout, lane_tile), jnp.float32)
    for i, off in enumerate(offs):
        xs = xpad_ref[:, pl.ds(base + (off + halo), lane_tile)]
        acc = acc + jnp.dot(w_ref[i], xs.astype(jnp.bfloat16),
                            preferred_element_type=jnp.float32)
    y = jnp.maximum(acc + b_ref[...], 0.0)          # ReLU; dropout == identity
    o_ref[...] = xres_ref[...] + y


@functools.partial(jax.jit, static_argnames=("d1", "d2", "ksize", "lane_tile"))
def lidtcn_block(x, valid, w1, b1, w2, b2, wf, bf, *, d1, d2, ksize, lane_tile):
    """x: (C, Lq); valid: (1, Lq) 1/0 row for the real L columns."""
    c_dim, lq = x.shape
    half = ksize // 2
    halo = half * max(d1, d2)

    # fold the 1x1 fuse conv into each dilated tap (fuse is linear -> exact)
    wfa, wfb = wf[:, :c_dim], wf[:, c_dim:]
    wc = jnp.concatenate(
        [jnp.einsum("oc,kci->koi", wfa, w1),
         jnp.einsum("oc,kci->koi", wfb, w2)], axis=0).astype(jnp.bfloat16)
    b_comb = (bf + wfa @ b1 + wfb @ b2).reshape(c_dim, 1)
    offs = tuple((kk - half) * d1 for kk in range(ksize)) + \
           tuple((kk - half) * d2 for kk in range(ksize))

    # zero beyond L (Conv1d zero padding semantics) + halo zeros on both sides
    xpad = jnp.pad(x * valid, ((0, 0), (halo, halo)))

    kernel = functools.partial(_tcn_kernel, lane_tile=lane_tile, halo=halo, offs=offs)
    return pl.pallas_call(
        kernel,
        out_shape=jax.ShapeDtypeStruct((c_dim, lq), jnp.float32),
        grid=(lq // lane_tile,),
        in_specs=[
            pl.BlockSpec((c_dim, lq + 2 * halo), lambda t: (0, 0)),   # resident
            pl.BlockSpec((c_dim, lane_tile), lambda t: (0, t)),       # residual
            pl.BlockSpec((2 * ksize, c_dim, c_dim), lambda t: (0, 0, 0)),
            pl.BlockSpec((c_dim, 1), lambda t: (0, 0)),
        ],
        out_specs=pl.BlockSpec((c_dim, lane_tile), lambda t: (0, t)),
        compiler_params=pltpu.CompilerParams(
            dimension_semantics=("parallel",),
            vmem_limit_bytes=48 * 1024 * 1024),
    )(xpad, x, wc, b_comb)


# ----------------------------------------------------------------------------
# Kernel 3: grouped sliding-window attention + folded conv_out/merge + residual
#   each grid step handles G = tile/bl consecutive attention blocks (lane-dense
#   output of width `tile`); all heads are processed inside the step.
# ----------------------------------------------------------------------------
def _att_kernel(q_ref, k_ref, v_ref, pm_ref, m_ref, bsum_ref, mhb_ref, x_ref,
                mq_ref, o_ref, *, bl, tile, wg, w_win, scale, num_heads):
    base = pl.multiple_of(pl.program_id(0) * tile, 128)

    rows = jax.lax.broadcasted_iota(jnp.int32, (tile, wg), 0)
    cols = jax.lax.broadcasted_iota(jnp.int32, (tile, wg), 1)
    # bl * (row // bl), via f32 floor to avoid integer vector division
    blk = (jnp.floor(rows.astype(jnp.float32) * (1.0 / bl)) * float(bl)).astype(jnp.int32)
    in_win = jnp.logical_and(cols >= blk, cols < blk + w_win)      # this block's 2*bl window
    allowed = jnp.logical_and(cols >= rows, cols < rows + bl).astype(jnp.float32)

    pm = pm_ref[:, pl.ds(base, wg)]                                 # (1, wg)
    fmask = allowed * pm                                            # (tile, wg)
    logm = jnp.log(fmask + 1e-6)

    acc = jnp.zeros((o_ref.shape[0], tile), jnp.float32)
    for h in range(num_heads):
        q = q_ref[h]                                                # (c, tile) bf16
        k = k_ref[h, :, pl.ds(base, wg)]                            # (c, wg)   bf16
        v = v_ref[h, :, pl.ds(base, wg)]                            # (c, wg)   bf16
        e = jax.lax.dot_general(q, k, (((0,), (0,)), ((), ())),
                                preferred_element_type=jnp.float32) * scale
        # columns outside the block's own window are excluded exactly (-inf);
        # inside it the reference log(mask + 1e-6) trick is reproduced.
        s = jnp.where(in_win, e + logm, -1e30)
        s = s - jnp.max(s, axis=-1, keepdims=True)
        p = jnp.exp(s)
        p = p * pl.reciprocal(jnp.sum(p, axis=-1, keepdims=True), approx=True)
        p = (p * fmask).astype(jnp.bfloat16)
        oh = jax.lax.dot_general(v, p, (((1,), (1,)), ((), ())),
                                 preferred_element_type=jnp.float32)  # (c, tile)
        oh = jnp.maximum(oh, 0.0).astype(jnp.bfloat16)                # ReLU
        acc = acc + jnp.dot(m_ref[h], oh, preferred_element_type=jnp.float32)

    # folded multi-head merge + mask + residual:  x + mask*(A + b_sum) + mh_b
    o_ref[...] = x_ref[...] + (acc + bsum_ref[...]) * mq_ref[...] + mhb_ref[...]


@functools.partial(jax.jit, static_argnames=("bl", "tile", "lane_tile"))
def attention_layer(x, x_tcn, mask_q, pm, valid, heads, mh_w, mh_b, *,
                    bl, tile, lane_tile):
    """Full MultiHeadAttLayer + residual.  Returns x + x_att, shape (F, Lq)."""
    f_dim, lq = x.shape
    num_heads = len(heads)
    c = heads[0]["wq"].shape[0]
    half = bl // 2
    wg = tile + 2 * half
    w_win = bl + 2 * half
    lk = lq + 2 * half
    ng = lq // tile

    # one fused QKV projection for all heads
    w_qkv = jnp.concatenate(
        [jnp.stack([hp["wq"] for hp in heads], 0),
         jnp.stack([hp["wk"] for hp in heads], 0),
         jnp.stack([hp["wv"] for hp in heads], 0)],
        axis=0).reshape(3 * num_heads * c, f_dim)
    b_qkv = jnp.concatenate(
        [jnp.stack([hp["bq"] for hp in heads], 0),
         jnp.stack([hp["bk"] for hp in heads], 0),
         jnp.stack([hp["bv"] for hp in heads], 0)],
        axis=0).reshape(3 * num_heads * c)

    qkv = pointwise_conv(x_tcn, w_qkv, b_qkv, lane_tile=lane_tile,
                         out_dtype=jnp.bfloat16)
    qkv = (qkv * valid.astype(jnp.bfloat16)).reshape(3, num_heads, c, lq)
    q_all = qkv[0]
    k_all = jnp.pad(qkv[1], ((0, 0), (0, 0), (half, half)))
    v_all = jnp.pad(qkv[2], ((0, 0), (0, 0), (half, half)))

    # fold per-head conv_out and the multi-head merge conv (both linear)
    m_all = jnp.stack(
        [mh_w[:, i * f_dim:(i + 1) * f_dim] @ heads[i]["wout"]
         for i in range(num_heads)], axis=0).astype(jnp.bfloat16)      # (H, F, c)
    b_sum = sum(mh_w[:, i * f_dim:(i + 1) * f_dim] @ heads[i]["bout"]
                for i in range(num_heads)).reshape(f_dim, 1)

    kernel = functools.partial(_att_kernel, bl=bl, tile=tile, wg=wg, w_win=w_win,
                               scale=1.0 / math.sqrt(c), num_heads=num_heads)
    return pl.pallas_call(
        kernel,
        out_shape=jax.ShapeDtypeStruct((f_dim, lq), jnp.float32),
        grid=(ng,),
        in_specs=[
            pl.BlockSpec((num_heads, c, tile), lambda g: (0, 0, g)),   # q tile
            pl.BlockSpec((num_heads, c, lk), lambda g: (0, 0, 0)),     # k resident
            pl.BlockSpec((num_heads, c, lk), lambda g: (0, 0, 0)),     # v resident
            pl.BlockSpec((1, lk), lambda g: (0, 0)),                   # padding mask
            pl.BlockSpec((num_heads, f_dim, c), lambda g: (0, 0, 0)),  # folded W
            pl.BlockSpec((f_dim, 1), lambda g: (0, 0)),                # folded bias
            pl.BlockSpec((f_dim, 1), lambda g: (0, 0)),                # mh bias
            pl.BlockSpec((f_dim, tile), lambda g: (0, g)),             # residual x
            pl.BlockSpec((1, tile), lambda g: (0, g)),                 # mask (q cols)
        ],
        out_specs=pl.BlockSpec((f_dim, tile), lambda g: (0, g)),
        compiler_params=pltpu.CompilerParams(
            dimension_semantics=("parallel",),
            vmem_limit_bytes=48 * 1024 * 1024),
    )(q_all, k_all, v_all, pm, m_all, b_sum, mh_b.reshape(f_dim, 1), x, mask_q)


# ----------------------------------------------------------------------------
# Full DualASFormer forward (batch == 1)
# ----------------------------------------------------------------------------
def dual_asformer_forward(params, x, mask, *, bl):
    """x: (1, in_dim, L); mask: (1, C, L)  ->  (1, num_classes, L)."""
    assert x.shape[0] == 1, "sliding-window attention requires batch == 1"
    _, _, seq_len = x.shape
    mask_row = mask[0, 0:1, :].astype(jnp.float32)               # (1, L)

    tile = _group_tile(bl)                                       # multiple of 128 and bl
    lq = -(-seq_len // tile) * tile
    half = bl // 2
    lane_tile = _pick_lane_tile(lq, tile)

    x2 = jnp.pad(x[0].astype(jnp.float32), ((0, 0), (0, lq - seq_len)))
    mask_q = jnp.pad(mask_row, ((0, 0), (0, lq - seq_len)))      # (1, Lq)
    pm = jnp.pad(mask_q, ((0, 0), (half, half)))                 # (1, Lq + 2*half)
    valid = (jnp.arange(lq) < seq_len).astype(jnp.float32)[None, :]

    h = pointwise_conv(x2, params["in_w"], params["in_b"], lane_tile=lane_tile)

    for lp in params["layers"]:
        tp = lp["tcn"]
        h_tcn = lidtcn_block(h, valid, tp["w1"], tp["b1"], tp["w2"], tp["b2"],
                             tp["wf"], tp["bf"], d1=tp["d1"], d2=tp["d2"],
                             ksize=tp["ksize"], lane_tile=lane_tile)
        h = attention_layer(h, h_tcn, mask_q, pm, valid,
                            lp["heads"], lp["mh_w"], lp["mh_b"],
                            bl=bl, tile=tile, lane_tile=lane_tile)

    out = pointwise_conv(h, params["dec_w"], params["dec_b"], lane_tile=lane_tile)
    out = out[:, :seq_len] * mask_row
    return out[None]                                             # (1, num_classes, L)


# ----------------------------------------------------------------------------
# Pure-JAX float32 reference (same assumed semantics), used for verification
# ----------------------------------------------------------------------------
def _ref_dilated_conv(x, w, b, d):
    _, seq_len = x.shape
    k = w.shape[0]
    half = k // 2
    xp = jnp.pad(x, ((0, 0), (half * d, half * d)))
    acc = jnp.zeros((w.shape[1], seq_len), jnp.float32)
    for kk in range(k):
        acc = acc + w[kk] @ xp[:, kk * d: kk * d + seq_len]
    return acc + b[:, None]


def _ref_lidtcn(x, tp):
    y1 = _ref_dilated_conv(x, tp["w1"], tp["b1"], tp["d1"])
    y2 = _ref_dilated_conv(x, tp["w2"], tp["b2"], tp["d2"])
    f = tp["wf"] @ jnp.concatenate([y1, y2], 0) + tp["bf"][:, None]
    return x + jnp.maximum(f, 0.0)


def _ref_sliding_att(q, k, v, mask_row, bl):
    c, seq_len = q.shape
    nb = -(-seq_len // bl)
    pad = nb * bl - seq_len
    half = bl // 2
    win = bl + 2 * half
    qq = jnp.pad(q, ((0, 0), (0, pad)))
    kk = jnp.pad(k, ((0, 0), (half, pad + half)))
    vv = jnp.pad(v, ((0, 0), (half, pad + half)))
    pm = jnp.pad(mask_row, ((0, 0), (half, pad + half)))
    rows = jnp.arange(bl)[:, None]
    cols = jnp.arange(win)[None, :]
    wmask = ((cols >= rows) & (cols < rows + bl)).astype(jnp.float32)
    outs = []
    for b in range(nb):
        qb = qq[:, b * bl:(b + 1) * bl]
        kb = kk[:, b * bl:b * bl + win]
        vb = vv[:, b * bl:b * bl + win]
        fm = wmask * pm[:, b * bl:b * bl + win]
        e = (qb.T @ kb) / math.sqrt(c)
        att = jax.nn.softmax(e + jnp.log(fm + 1e-6), axis=-1) * fm
        outs.append(vb @ att.T)
    return jnp.concatenate(outs, axis=1)[:, :seq_len]


def _ref_att_head(x, hp, mask_row, bl):
    q = hp["wq"] @ x + hp["bq"][:, None]
    k = hp["wk"] @ x + hp["bk"][:, None]
    v = hp["wv"] @ x + hp["bv"][:, None]
    o = _ref_sliding_att(q, k, v, mask_row, bl)
    o = hp["wout"] @ jnp.maximum(o, 0.0) + hp["bout"][:, None]
    return o * mask_row


def forward_reference(params, x, mask, *, bl):
    x2 = x[0].astype(jnp.float32)
    mask_row = mask[0, 0:1, :].astype(jnp.float32)
    h = params["in_w"] @ x2 + params["in_b"][:, None]
    for lp in params["layers"]:
        ht = _ref_lidtcn(h, lp["tcn"])
        cat = jnp.concatenate([_ref_att_head(ht, hp, mask_row, bl)
                               for hp in lp["heads"]], 0)
        h = h + lp["mh_w"] @ cat + lp["mh_b"][:, None]
    out = (params["dec_w"] @ h + params["dec_b"][:, None]) * mask_row
    return out[None]


# ----------------------------------------------------------------------------
# Deterministic parameter initialization (synthetic weights, PyTorch layout)
# ----------------------------------------------------------------------------
def init_params(key, in_dim, num_classes, num_layers, num_f_maps, ksize, num_head):
    keys = iter(jax.random.split(key, 4 + num_layers * (10 + 8 * num_head)))

    def w(shape, scale=0.1):
        return jax.random.normal(next(keys), shape, jnp.float32) * scale

    f_dim = num_f_maps
    params = {
        "in_w": w((f_dim, in_dim)), "in_b": w((f_dim,), 0.01),
        "dec_w": w((num_classes, f_dim)), "dec_b": w((num_classes,), 0.01),
        "layers": [],
    }
    c = f_dim // 2   # r1 = r2 = r3 = 2
    for i in range(num_layers):
        layer = {
            "tcn": {
                "w1": w((ksize, f_dim, f_dim)), "b1": w((f_dim,), 0.01),
                "w2": w((ksize, f_dim, f_dim)), "b2": w((f_dim,), 0.01),
                "wf": w((f_dim, 2 * f_dim)), "bf": w((f_dim,), 0.01),
                "d1": 1 << i, "d2": 3 << i, "ksize": ksize,
            },
            "heads": [],
            "mh_w": w((f_dim, f_dim * num_head)), "mh_b": w((f_dim,), 0.01),
        }
        for _ in range(num_head):
            layer["heads"].append({
                "wq": w((c, f_dim)), "bq": w((c,), 0.01),
                "wk": w((c, f_dim)), "bk": w((c,), 0.01),
                "wv": w((c, f_dim)), "bv": w((c,), 0.01),
                "wout": w((f_dim, c)), "bout": w((f_dim,), 0.01),
            })
        params["layers"].append(layer)
    return params


# ----------------------------------------------------------------------------
if __name__ == "__main__":
    # Small, forward-consistent shapes.
    in_dim, num_classes, num_layers = 12, 6, 2
    num_f_maps, kernel_size, att_heads, block_len = 16, 3, 2, 8
    seq_len = 20                 # not a multiple of block_len -> exercises padding

    key = jax.random.PRNGKey(0)
    kx, kp = jax.random.split(key)
    x = jax.random.normal(kx, (1, in_dim, seq_len), jnp.float32)
    mask = jnp.ones((1, num_classes, seq_len), jnp.float32)
    mask = mask.at[:, :, seq_len - 3:].set(0.0)   # padded tail, like real sequences

    params = init_params(kp, in_dim, num_classes, num_layers,
                         num_f_maps, kernel_size, att_heads)

    out = dual_asformer_forward(params, x, mask, bl=block_len)
    out = jax.block_until_ready(out)

    ref = forward_reference(params, x, mask, bl=block_len)

    assert out.shape == (1, num_classes, seq_len)
    assert bool(jnp.all(jnp.isfinite(out)))
    err = float(jnp.max(jnp.abs(out - ref)))
    assert err < 5e-2, f"kernel/reference mismatch: max abs err = {err}"
    # masked tail must be exactly zero (decoder output * mask)
    assert bool(jnp.all(out[:, :, seq_len - 3:] == 0.0))
    print("KERNEL_OK")
</pallas_src>

<mosaic_0001>
module attributes {stable_mosaic.version = 11 : i64} {
  func.func @_pointwise_kernel(%arg0: i32, %arg1: memref<12x128xf32, #tpu.memory_space<vmem>>, %arg2: memref<16x12xf32, #tpu.memory_space<vmem>>, %arg3: memref<16x1xf32, #tpu.memory_space<vmem>>, %arg4: memref<16x128xf32, #tpu.memory_space<vmem>>) attributes {dimension_semantics = [#tpu.dimension_semantics<parallel>], iteration_bounds = array<i64: 1>, scalar_prefetch = 0 : i64, scratch_operands = 0 : i64, tpu.core_type = #tpu.core_type<tc>, window_params = [{transform_indices = @transform_0, window_bounds = array<i64: 12, 128>}, {pipeline_mode = #tpu.pipeline_mode<synchronous>, transform_indices = @transform_1, window_bounds = array<i64: 16, 12>}, {pipeline_mode = #tpu.pipeline_mode<synchronous>, transform_indices = @transform_2, window_bounds = array<i64: 16, 1>}, {transform_indices = @transform_3, window_bounds = array<i64: 16, 128>}]} {
    %c0 = arith.constant 0 : index
    %c0_0 = arith.constant 0 : index
    %0 = vector.load %arg2[%c0, %c0_0] : memref<16x12xf32, #tpu.memory_space<vmem>>, vector<16x12xf32>
    %1 = arith.truncf %0 : vector<16x12xf32> to vector<16x12xbf16>
    %c0_1 = arith.constant 0 : index
    %c0_2 = arith.constant 0 : index
    %2 = vector.load %arg1[%c0_1, %c0_2] : memref<12x128xf32, #tpu.memory_space<vmem>>, vector<12x128xf32>
    %3 = arith.truncf %2 : vector<12x128xf32> to vector<12x128xbf16>
    %cst = arith.constant dense<0.000000e+00> : vector<16x128xf32>
    %4 = tpu.matmul %1, %3, %cst {dimension_numbers = #tpu.dot_dimension_numbers<[1], [0], [0], [1], [0, 0, 1, 1], [], []>} : vector<16x12xbf16>, vector<12x128xbf16>, vector<16x128xf32> -> vector<16x128xf32>
    %c0_3 = arith.constant 0 : index
    %c0_4 = arith.constant 0 : index
    %5 = vector.load %arg3[%c0_3, %c0_4] : memref<16x1xf32, #tpu.memory_space<vmem>>, vector<16x1xf32>
    %6 = vector.broadcast %5 : vector<16x1xf32> to vector<16x128xf32>
    %7 = arith.addf %4, %6 : vector<16x128xf32>
    %c0_5 = arith.constant 0 : index
    %c0_6 = arith.constant 0 : index
    %8 = vector.load %arg4[%c0_5, %c0_6] : memref<16x128xf32, #tpu.memory_space<vmem>>, vector<16x128xf32>
    tpu.vector_store %arg4[%c0_5, %c0_6], %7 {strides = array<i32>} : memref<16x128xf32, #tpu.memory_space<vmem>>, vector<16x128xf32>,
    return
  }
  func.func @transform_0(%arg0: i32) -> (i32, i32) {
    %c0_i32 = arith.constant 0 : i32
    %c0_i32_0 = arith.constant 0 : i32
    return %c0_i32, %arg0 : i32, i32
  }
  func.func @transform_1(%arg0: i32) -> (i32, i32) {
    %c0_i32 = arith.constant 0 : i32
    %c0_i32_0 = arith.constant 0 : i32
    %c0_i32_1 = arith.constant 0 : i32
    return %c0_i32, %c0_i32_0 : i32, i32
  }
  func.func @transform_2(%arg0: i32) -> (i32, i32) {
    %c0_i32 = arith.constant 0 : i32
    %c0_i32_0 = arith.constant 0 : i32
    %c0_i32_1 = arith.constant 0 : i32
    return %c0_i32, %c0_i32_0 : i32, i32
  }
  func.func @transform_3(%arg0: i32) -> (i32, i32) {
    %c0_i32 = arith.constant 0 : i32
    %c0_i32_0 = arith.constant 0 : i32
    return %c0_i32, %arg0 : i32, i32
  }
}

</mosaic_0001>

<bundles_post_ra>
// kernel: pointwise_conv.1
= control target key start
LH: loop header
LB: loop body
LE: loop exit
PB: predicated region body
PF: predicated region fallthrough
CT: control target
= control target key end

     0   :  { %8 = vsyncpa [#allocation3], 0  ;;  %s228_s0 = inlined_call_operand.vmem [shape: f32[12,128], index: 0, kind: input, shape index: {}]   ;;  %s229_s1 = inlined_call_operand.hbm [shape: f32[16,12], index: 1, kind: input, shape index: {}]   ;;  %s230_s2 = inlined_call_operand.vmem [shape: f32[16,1], index: 2, kind: input, shape index: {}]   ;;  %s231_s3 = inlined_call_operand.hbm [shape: f32[16,128], index: 3, kind: output, shape index: {}]  }
   0x1   :  { %9 = vsyncpa [#allocation4], 0  ;;  %s177_s12 = smov [#allocation2]  }
   0x2   :  { %s17_s13 = sshll.u32 %s177_s12, 4  ;;  %s18_s13 = int_to_ptr.vmem [resolvable:$true] %s17_s13 }
   0x3   :  { %s141_s14 = scalar_lea.vmem %s18_s13, 256  ;;  %p146_p1 = scmp.lt.s32.totalorder %s18_s13, %s18_s13 }
   0x4   :  { %p142_p0 = scmp.ne.s32.totalorder %s18_s13, %s141_s14  ;;  %p147_p2 = scmp.lt.s32.totalorder %s141_s14, %s141_s14 }
   0x6   :  { %p148_p3 = por %p147_p2, %p146_p1 }
   0x8   :  { %p149_p4 = pnand %p148_p3, %p142_p0 }
   0xa   :  { %152 = shalt.err (!%p149_p4)
}
   0xb   :  { %s178_s15 = smov 128   ;;  %s179_s16 = smov 8  }
   0xc   :  { %23 = dma.hbm_to_vmem [thread:$0]  %s229_s1, 256, %s18_s13, [#allocation3], %s178_s15, %s178_s15, %s179_s16  }
   0xd   :  { %173 = dma.done.wait [#allocation3], 256  }
   0xe   :  { %174 = vsyncadd [#allocation3], 4294967040  ;;  %v180_v0 = vmov 0.0   ;;  %vm181_vm0 = vmmov 0   ;;  %v182_v1 = vmov 0   ;;  %v33_v2 = vld [vmem:[%s228_s0] sm:$0xff] }
   0xf   :  { %119 = vmatprep.subr.bf16.mxu0 %v180_v0  ;;  %121 = vmatprep.mubr.msk.bf16.mxu0 %vm181_vm0, %v180_v0  ;;  %v34_v3 = vld [vmem:[%s228_s0 + $0x8] sm:$0xf]  ;;  %vm52_vm1 = vcmask 1045504   ;;  %v30_v4 = vld [vmem:[#allocation2] sm:$0xff]  ;;  %vm48_vm2 = vcmask 97280   ;;  %s183_s0 = smov [#allocation5]  }
  0x10   :  { %132 = vset.pattern.permute.xlu0 %v182_v1  ;;  %v35_v5 = vpack.c.bf16 %v34_v3, %v33_v2  ;;  %v31_v6 = vld [vmem:[#allocation2 + $0x8] sm:$0xff]  ;;  %v36_v7 = vld [vmem:[%s230_s2] sm:$0xff]  ;;  %s104_s26 = sshll.u32 %s183_s0, 4  ;;  %s105_s26 = int_to_ptr.vmem [resolvable:$true] %s104_s26 }
  0x11   :  { %40 = vperm.xlu0 %132, %v36_v7   ;;  %v32_v9 = vpack.c.bf16 %v31_v6, %v30_v4  ;;  %v37_v10 = vld [vmem:[%s230_s2 + $0x8] sm:$0xff]  ;;  %s153_s27 = scalar_lea.vmem %s105_s26, 256  ;;  %p158_p6 = scmp.lt.s32.totalorder %s105_s26, %s105_s26 }
  0x12   :  { %v54_v8 = vsel %vm52_vm1, %v35_v5, 0  ;;  %p154_p5 = scmp.ne.s32.totalorder %s105_s26, %s153_s27  ;;  %p159_p7 = scmp.lt.s32.totalorder %s153_s27, %s153_s27 }
  0x13   :  { %120 = vmatpush3.bf16.msra.mxu0 %v54_v8 }
  0x14   :  { %p160_p8 = por %p159_p7, %p158_p6 }
  0x15   :  { %45 = vperm.xlu0 %132, %v37_v10  }
  0x16   :  { %122 = vmatmul.mubr.msk.bf16.vlgmr.msra.gmra.mxu0 %vm48_vm2, %v32_v9  ;;  %p161_p9 = pnand %p160_p8, %p154_p5 }
  0x8c   :  { %v41_v11 = vpop.permute.xlu0 %40 }
  0x90   :  { %v46_v15 = vpop.permute.xlu0 %45 }
  0xd6   :  { %v90_v12 = vpop.f32.mrf.mxu0 }
  0xd7   :  { %v91_v13 = vadd.f32 %v90_v12, %v41_v11 }
  0xd8   :  { %v123_v14 = vpop.f32.mrf.mxu0 }
  0xd9   :  { %97 = vst [vmem:[#allocation5] sm:$0xff] %v91_v13 }
  0xda   :  { %v93_v16 = vpop.f32.mrf.mxu0 }
  0xdb   :  { %v94_v17 = vadd.f32 %v93_v16, %v46_v15 }
  0xdc   :  { %v124_v18 = vpop.f32.mrf.mxu0 }
  0xdd   :  { %98 = vst [vmem:[#allocation5 + $0x8] sm:$0xff] %v94_v17 }
  0xde   :  { %164 = shalt.err (!%p161_p9)
}
  0xdf   :  { %110 = dma.vmem_to_hbm [thread:$0]  %s105_s26, 256, %s231_s3, [#allocation4], %s178_s15, %s178_s15, %s179_s16  }
  0xe0   :  { %175 = dma.done.wait [#allocation4], 256  }
  0xe1   :  { %176 = vsyncadd [#allocation4], 4294967040 }
  0xe2   :  { %114 = vsyncpa [#allocation3], 1 }
  0xe3   :  { %115 = vsyncpa [#allocation4], 1 }

</bundles_post_ra>
